<compile_context>
chip_gen: v7x
topology: tpu7x:2x2x1
jax: 0.10.0
libtpu: 0.0.40
codegen_flags: <defaults>
</compile_context>

<pallas_src>
import functools

import jax
import jax.numpy as jnp
from jax.experimental import pallas as pl
from jax.experimental.pallas import tpu as pltpu


# ------------------------------- kernel ------------------------------------

def _make_kernel(dims):
    in_dim, enc_h, end_w, latent, dec_h, out_dim = dims

    def kernel(x_ref, eps_ref, w_ref, b_ref, lg_ref, mu_ref, lv_ref):
        f32 = jnp.float32
        x = x_ref[...]                                  # [in_dim, bt]

        # ---- encoder: Linear + ReLU, Linear + ReLU (transposed layout) ----
        h = jnp.dot(w_ref[0, :enc_h, :in_dim], x,
                    preferred_element_type=f32) + b_ref[0, :enc_h, :]
        h = jnp.maximum(h, 0.0)                         # [enc_h, bt]
        h = jnp.dot(w_ref[1, :end_w, :enc_h], h,
                    preferred_element_type=f32) + b_ref[1, :end_w, :]
        h = jnp.maximum(h, 0.0)                         # [end_w, bt]

        # ---- fused latent heads (mu | log_var in one matmul) ----
        heads = jnp.dot(w_ref[2, :2 * latent, :end_w], h,
                        preferred_element_type=f32) + b_ref[2, :2 * latent, :]
        mu = heads[:latent, :]                          # [latent, bt]
        log_var = heads[latent:2 * latent, :]           # [latent, bt]

        # ---- reparameterize: z = mu + eps * exp(0.5 * log_var) ----
        z = mu + eps_ref[...] * jnp.exp(0.5 * log_var)  # [latent, bt]

        # ---- decoder: Linear + ReLU, Linear + ReLU ----
        d = jnp.dot(w_ref[3, :dec_h, :latent], z,
                    preferred_element_type=f32) + b_ref[3, :dec_h, :]
        d = jnp.maximum(d, 0.0)                         # [dec_h, bt]
        d = jnp.dot(w_ref[4, :end_w, :dec_h], d,
                    preferred_element_type=f32) + b_ref[4, :end_w, :]
        d = jnp.maximum(d, 0.0)                         # [end_w, bt]

        # ---- final layer + clamp: log_gamma[log_gamma < -12] = -12 ----
        lg = jnp.dot(w_ref[5, :out_dim, :end_w], d,
                     preferred_element_type=f32) + b_ref[5, :out_dim, :]
        lg = jnp.maximum(lg, -12.0)                     # [out_dim, bt]

        lg_ref[...] = lg
        mu_ref[...] = mu
        lv_ref[...] = log_var

    return kernel


# ------------------------------- wrapper ------------------------------------

def csvae_forward(x, eps, w_all, b_all, dims, *, batch_tile=128):
    """Pallas-backed forward. Returns (log_gamma, mu, log_var), each [B, .]."""
    in_dim, enc_h, end_w, latent, dec_h, out_dim = dims
    assert batch_tile % 128 == 0, "batch tile must be lane-dense (multiple of 128)"

    B = x.shape[0]
    bt = batch_tile
    B_pad = pl.cdiv(B, bt) * bt
    pad = B_pad - B

    # Layout plumbing: batch on the lane (last) axis, zero-pad to tile multiple.
    xT = jnp.pad(x, ((0, pad), (0, 0))).T               # [in_dim, B_pad]
    epsT = jnp.pad(eps, ((0, pad), (0, 0))).T           # [latent, B_pad]

    grid = (B_pad // bt,)

    in_specs = [
        pl.BlockSpec((in_dim, bt), lambda i: (0, i)),
        pl.BlockSpec((latent, bt), lambda i: (0, i)),
        pl.BlockSpec(w_all.shape, lambda i: (0, 0, 0)),   # grid-invariant params
        pl.BlockSpec(b_all.shape, lambda i: (0, 0, 0)),
    ]
    out_specs = [
        pl.BlockSpec((out_dim, bt), lambda i: (0, i)),
        pl.BlockSpec((latent, bt), lambda i: (0, i)),
        pl.BlockSpec((latent, bt), lambda i: (0, i)),
    ]
    out_shape = [
        jax.ShapeDtypeStruct((out_dim, B_pad), jnp.float32),
        jax.ShapeDtypeStruct((latent, B_pad), jnp.float32),
        jax.ShapeDtypeStruct((latent, B_pad), jnp.float32),
    ]

    flops_per_row = 2 * (in_dim * enc_h + enc_h * end_w + end_w * 2 * latent
                         + latent * dec_h + dec_h * end_w + end_w * out_dim)
    cost = pl.CostEstimate(
        flops=flops_per_row * B_pad,
        transcendentals=B_pad * latent,
        bytes_accessed=4 * (B_pad * (in_dim + 3 * latent + out_dim)
                            + w_all.size + b_all.size),
    )

    lgT, muT, lvT = pl.pallas_call(
        _make_kernel(dims),
        grid=grid,
        in_specs=in_specs,
        out_specs=out_specs,
        out_shape=out_shape,
        compiler_params=pltpu.CompilerParams(
            dimension_semantics=("parallel",)),
        cost_estimate=cost,
    )(xT, epsT, w_all, b_all)

    # Back to the module's [batch, features] convention; drop batch padding.
    return lgT.T[:B], muT.T[:B], lvT.T[:B]


# ----------------------------- parameter setup -----------------------------

def _linear_init(key, fan_in, fan_out):
    """Deterministic init mimicking torch.nn.Linear (PyTorch [out, in] layout)."""
    kw, kb = jax.random.split(key)
    bound = 1.0 / (fan_in ** 0.5)
    w = jax.random.uniform(kw, (fan_out, fan_in), jnp.float32, -bound, bound)
    b = jax.random.uniform(kb, (fan_out,), jnp.float32, -bound, bound)
    return w, b


def init_csvae_params(key, input_dim, latent_dim, output_dim,
                      n_enc, n_dec, end_width):
    """Reproduces the layer-width schedule of CSVAE_core.__init__ (n_enc=n_dec=2)."""
    assert n_enc == 2 and n_dec == 2, "this script instantiates the 2-layer case"
    if end_width > input_dim:
        steps_enc = (end_width - input_dim) // (n_enc - 1)
    else:
        steps_enc = -((input_dim - end_width) // (n_enc - 1))
    enc_dims = [input_dim, input_dim + steps_enc, end_width]

    steps_dec = (end_width - latent_dim) // (n_dec - 1)
    dec_dims = [latent_dim, latent_dim + steps_dec, end_width]

    keys = jax.random.split(key, 7)
    we0, be0 = _linear_init(keys[0], enc_dims[0], enc_dims[1])
    we1, be1 = _linear_init(keys[1], enc_dims[1], enc_dims[2])
    wmu, bmu = _linear_init(keys[2], end_width, latent_dim)
    wvar, bvar = _linear_init(keys[3], end_width, latent_dim)
    wd0, bd0 = _linear_init(keys[4], dec_dims[0], dec_dims[1])
    wd1, bd1 = _linear_init(keys[5], dec_dims[1], dec_dims[2])
    wf, bf = _linear_init(keys[6], end_width, output_dim)
    params = (we0, be0, we1, be1, wmu, bmu, wvar, bvar,
              wd0, bd0, wd1, bd1, wf, bf)
    dims = (input_dim, enc_dims[1], end_width, latent_dim, dec_dims[1],
            output_dim)
    return params, dims


def pack_params(params):
    """Pack the 7 Linear layers into 2 zero-padded arrays; fuse mu/var heads."""
    (we0, be0, we1, be1, wmu, bmu, wvar, bvar,
     wd0, bd0, wd1, bd1, wf, bf) = params
    w_heads = jnp.concatenate([wmu, wvar], axis=0)     # [2*latent, end_w]
    b_heads = jnp.concatenate([bmu, bvar], axis=0)
    layers = [(we0, be0), (we1, be1), (w_heads, b_heads),
              (wd0, bd0), (wd1, bd1), (wf, bf)]
    p = max(max(w.shape) for w, _ in layers)
    p = -(-p // 8) * 8                                  # round up to sublanes
    n = len(layers)
    w_all = jnp.zeros((n, p, p), jnp.float32)
    b_all = jnp.zeros((n, p, 1), jnp.float32)
    for j, (w, b) in enumerate(layers):
        o, i = w.shape
        w_all = w_all.at[j, :o, :i].set(w)
        b_all = b_all.at[j, :o, 0].set(b)
    return w_all, b_all


def csvae_reference(x, eps, params):
    """Pure-JAX reference of the same forward pass (for correctness check)."""
    (we0, be0, we1, be1, wmu, bmu, wvar, bvar,
     wd0, bd0, wd1, bd1, wf, bf) = params
    h = jnp.maximum(x @ we0.T + be0, 0.0)
    h = jnp.maximum(h @ we1.T + be1, 0.0)
    mu = h @ wmu.T + bmu
    log_var = h @ wvar.T + bvar
    z = mu + eps * jnp.exp(0.5 * log_var)
    d = jnp.maximum(z @ wd0.T + bd0, 0.0)
    d = jnp.maximum(d @ wd1.T + bd1, 0.0)
    lg = jnp.maximum(d @ wf.T + bf, -12.0)
    return lg, mu, log_var


if __name__ == "__main__":
    input_dim, latent_dim, output_dim = 16, 8, 16
    n_enc, n_dec, end_width = 2, 2, 32
    batch = 256          # 2 lane-dense tiles of 128 -> grid=2 ("parallel")
    batch_tile = 128

    key = jax.random.PRNGKey(0)
    k_params, k_x, k_eps = jax.random.split(key, 3)

    params, dims = init_csvae_params(k_params, input_dim, latent_dim,
                                     output_dim, n_enc, n_dec, end_width)
    w_all, b_all = pack_params(params)

    x = jax.random.normal(k_x, (batch, input_dim), jnp.float32)
    eps = jax.random.normal(k_eps, (batch, latent_dim), jnp.float32)

    fwd = jax.jit(functools.partial(csvae_forward, dims=dims,
                                    batch_tile=batch_tile))
    log_gamma, mu, log_var = fwd(x, eps, w_all, b_all)
    jax.block_until_ready((log_gamma, mu, log_var))

    lg_ref, mu_ref, lv_ref = csvae_reference(x, eps, params)
    assert log_gamma.shape == (batch, output_dim)
    assert mu.shape == (batch, latent_dim) and log_var.shape == (batch, latent_dim)
    assert jnp.allclose(log_gamma, lg_ref, atol=1e-3, rtol=1e-3)
    assert jnp.allclose(mu, mu_ref, atol=1e-3, rtol=1e-3)
    assert jnp.allclose(log_var, lv_ref, atol=1e-3, rtol=1e-3)

    print("KERNEL_OK")
</pallas_src>

<mosaic_0001>
module attributes {stable_mosaic.version = 11 : i64} {
  func.func @kernel(%arg0: i32, %arg1: memref<16x128xf32, #tpu.memory_space<vmem>>, %arg2: memref<8x128xf32, #tpu.memory_space<vmem>>, %arg3: memref<6x32x32xf32, #tpu.memory_space<vmem>>, %arg4: memref<6x32x1xf32, #tpu.memory_space<vmem>>, %arg5: memref<16x128xf32, #tpu.memory_space<vmem>>, %arg6: memref<8x128xf32, #tpu.memory_space<vmem>>, %arg7: memref<8x128xf32, #tpu.memory_space<vmem>>) attributes {dimension_semantics = [#tpu.dimension_semantics<parallel>], iteration_bounds = array<i64: 2>, scalar_prefetch = 0 : i64, scratch_operands = 0 : i64, tpu.core_type = #tpu.core_type<tc>, window_params = [{transform_indices = @transform_0, window_bounds = array<i64: 16, 128>}, {transform_indices = @transform_1, window_bounds = array<i64: 8, 128>}, {pipeline_mode = #tpu.pipeline_mode<synchronous>, transform_indices = @transform_2, window_bounds = array<i64: 6, 32, 32>}, {pipeline_mode = #tpu.pipeline_mode<synchronous>, transform_indices = @transform_3, window_bounds = array<i64: 6, 32, 1>}, {transform_indices = @transform_4, window_bounds = array<i64: 16, 128>}, {transform_indices = @transform_5, window_bounds = array<i64: 8, 128>}, {transform_indices = @transform_6, window_bounds = array<i64: 8, 128>}]} {
    %c0 = arith.constant 0 : index
    %c0_0 = arith.constant 0 : index
    %0 = vector.load %arg1[%c0, %c0_0] : memref<16x128xf32, #tpu.memory_space<vmem>>, vector<16x128xf32>
    %c0_1 = arith.constant 0 : index
    %c0_2 = arith.constant 0 : index
    %c0_3 = arith.constant 0 : index
    %1 = vector.load %arg3[%c0_1, %c0_2, %c0_3] : memref<6x32x32xf32, #tpu.memory_space<vmem>>, vector<1x32x16xf32>
    %2 = vector.shape_cast %1 : vector<1x32x16xf32> to vector<32x16xf32>
    %cst = arith.constant dense<0.000000e+00> : vector<32x128xf32>
    %3 = tpu.matmul %2, %0, %cst {dimension_numbers = #tpu.dot_dimension_numbers<[1], [0], [0], [1], [0, 0, 1, 1], [], []>} : vector<32x16xf32>, vector<16x128xf32>, vector<32x128xf32> -> vector<32x128xf32>
    %c0_4 = arith.constant 0 : index
    %c0_5 = arith.constant 0 : index
    %c0_6 = arith.constant 0 : index
    %4 = vector.load %arg4[%c0_4, %c0_5, %c0_6] : memref<6x32x1xf32, #tpu.memory_space<vmem>>, vector<1x32x1xf32>
    %5 = vector.shape_cast %4 : vector<1x32x1xf32> to vector<32x1xf32>
    %6 = vector.broadcast %5 : vector<32x1xf32> to vector<32x128xf32>
    %7 = arith.addf %3, %6 : vector<32x128xf32>
    %cst_7 = arith.constant 0.000000e+00 : f32
    %8 = vector.broadcast %cst_7 : f32 to vector<32x128xf32>
    %9 = arith.maximumf %7, %8 : vector<32x128xf32>
    %c1 = arith.constant 1 : index
    %c0_8 = arith.constant 0 : index
    %c0_9 = arith.constant 0 : index
    %10 = vector.load %arg3[%c1, %c0_8, %c0_9] : memref<6x32x32xf32, #tpu.memory_space<vmem>>, vector<1x32x32xf32>
    %11 = vector.shape_cast %10 : vector<1x32x32xf32> to vector<32x32xf32>
    %cst_10 = arith.constant dense<0.000000e+00> : vector<32x128xf32>
    %12 = tpu.matmul %11, %9, %cst_10 {dimension_numbers = #tpu.dot_dimension_numbers<[1], [0], [0], [1], [0, 0, 1, 1], [], []>} : vector<32x32xf32>, vector<32x128xf32>, vector<32x128xf32> -> vector<32x128xf32>
    %c1_11 = arith.constant 1 : index
    %c0_12 = arith.constant 0 : index
    %c0_13 = arith.constant 0 : index
    %13 = vector.load %arg4[%c1_11, %c0_12, %c0_13] : memref<6x32x1xf32, #tpu.memory_space<vmem>>, vector<1x32x1xf32>
    %14 = vector.shape_cast %13 : vector<1x32x1xf32> to vector<32x1xf32>
    %15 = vector.broadcast %14 : vector<32x1xf32> to vector<32x128xf32>
    %16 = arith.addf %12, %15 : vector<32x128xf32>
    %cst_14 = arith.constant 0.000000e+00 : f32
    %17 = vector.broadcast %cst_14 : f32 to vector<32x128xf32>
    %18 = arith.maximumf %16, %17 : vector<32x128xf32>
    %c2 = arith.constant 2 : index
    %c0_15 = arith.constant 0 : index
    %c0_16 = arith.constant 0 : index
    %19 = vector.load %arg3[%c2, %c0_15, %c0_16] : memref<6x32x32xf32, #tpu.memory_space<vmem>>, vector<1x16x32xf32>
    %20 = vector.shape_cast %19 : vector<1x16x32xf32> to vector<16x32xf32>
    %cst_17 = arith.constant dense<0.000000e+00> : vector<16x128xf32>
    %21 = tpu.matmul %20, %18, %cst_17 {dimension_numbers = #tpu.dot_dimension_numbers<[1], [0], [0], [1], [0, 0, 1, 1], [], []>} : vector<16x32xf32>, vector<32x128xf32>, vector<16x128xf32> -> vector<16x128xf32>
    %c2_18 = arith.constant 2 : index
    %c0_19 = arith.constant 0 : index
    %c0_20 = arith.constant 0 : index
    %22 = vector.load %arg4[%c2_18, %c0_19, %c0_20] : memref<6x32x1xf32, #tpu.memory_space<vmem>>, vector<1x16x1xf32>
    %23 = vector.shape_cast %22 : vector<1x16x1xf32> to vector<16x1xf32>
    %24 = vector.broadcast %23 : vector<16x1xf32> to vector<16x128xf32>
    %25 = arith.addf %21, %24 : vector<16x128xf32>
    %26 = vector.extract_strided_slice %25 {offsets = [0, 0], sizes = [8, 128], strides = [1, 1]} : vector<16x128xf32> to vector<8x128xf32>
    %27 = vector.extract_strided_slice %25 {offsets = [8, 0], sizes = [8, 128], strides = [1, 1]} : vector<16x128xf32> to vector<8x128xf32>
    %c0_21 = arith.constant 0 : index
    %c0_22 = arith.constant 0 : index
    %28 = vector.load %arg2[%c0_21, %c0_22] : memref<8x128xf32, #tpu.memory_space<vmem>>, vector<8x128xf32>
    %cst_23 = arith.constant 5.000000e-01 : f32
    %29 = vector.broadcast %cst_23 : f32 to vector<8x128xf32>
    %30 = arith.mulf %29, %27 : vector<8x128xf32>
    %31 = math.exp %30 : vector<8x128xf32>
    %32 = arith.mulf %28, %31 : vector<8x128xf32>
    %33 = arith.addf %26, %32 : vector<8x128xf32>
    %c3 = arith.constant 3 : index
    %c0_24 = arith.constant 0 : index
    %c0_25 = arith.constant 0 : index
    %34 = vector.load %arg3[%c3, %c0_24, %c0_25] : memref<6x32x32xf32, #tpu.memory_space<vmem>>, vector<1x32x8xf32>
    %35 = vector.shape_cast %34 : vector<1x32x8xf32> to vector<32x8xf32>
    %cst_26 = arith.constant dense<0.000000e+00> : vector<32x128xf32>
    %36 = tpu.matmul %35, %33, %cst_26 {dimension_numbers = #tpu.dot_dimension_numbers<[1], [0], [0], [1], [0, 0, 1, 1], [], []>} : vector<32x8xf32>, vector<8x128xf32>, vector<32x128xf32> -> vector<32x128xf32>
    %c3_27 = arith.constant 3 : index
    %c0_28 = arith.constant 0 : index
    %c0_29 = arith.constant 0 : index
    %37 = vector.load %arg4[%c3_27, %c0_28, %c0_29] : memref<6x32x1xf32, #tpu.memory_space<vmem>>, vector<1x32x1xf32>
    %38 = vector.shape_cast %37 : vector<1x32x1xf32> to vector<32x1xf32>
    %39 = vector.broadcast %38 : vector<32x1xf32> to vector<32x128xf32>
    %40 = arith.addf %36, %39 : vector<32x128xf32>
    %cst_30 = arith.constant 0.000000e+00 : f32
    %41 = vector.broadcast %cst_30 : f32 to vector<32x128xf32>
    %42 = arith.maximumf %40, %41 : vector<32x128xf32>
    %c4 = arith.constant 4 : index
    %c0_31 = arith.constant 0 : index
    %c0_32 = arith.constant 0 : index
    %43 = vector.load %arg3[%c4, %c0_31, %c0_32] : memref<6x32x32xf32, #tpu.memory_space<vmem>>, vector<1x32x32xf32>
    %44 = vector.shape_cast %43 : vector<1x32x32xf32> to vector<32x32xf32>
    %cst_33 = arith.constant dense<0.000000e+00> : vector<32x128xf32>
    %45 = tpu.matmul %44, %42, %cst_33 {dimension_numbers = #tpu.dot_dimension_numbers<[1], [0], [0], [1], [0, 0, 1, 1], [], []>} : vector<32x32xf32>, vector<32x128xf32>, vector<32x128xf32> -> vector<32x128xf32>
    %c4_34 = arith.constant 4 : index
    %c0_35 = arith.constant 0 : index
    %c0_36 = arith.constant 0 : index
    %46 = vector.load %arg4[%c4_34, %c0_35, %c0_36] : memref<6x32x1xf32, #tpu.memory_space<vmem>>, vector<1x32x1xf32>
    %47 = vector.shape_cast %46 : vector<1x32x1xf32> to vector<32x1xf32>
    %48 = vector.broadcast %47 : vector<32x1xf32> to vector<32x128xf32>
    %49 = arith.addf %45, %48 : vector<32x128xf32>
    %cst_37 = arith.constant 0.000000e+00 : f32
    %50 = vector.broadcast %cst_37 : f32 to vector<32x128xf32>
    %51 = arith.maximumf %49, %50 : vector<32x128xf32>
    %c5 = arith.constant 5 : index
    %c0_38 = arith.constant 0 : index
    %c0_39 = arith.constant 0 : index
    %52 = vector.load %arg3[%c5, %c0_38, %c0_39] : memref<6x32x32xf32, #tpu.memory_space<vmem>>, vector<1x16x32xf32>
    %53 = vector.shape_cast %52 : vector<1x16x32xf32> to vector<16x32xf32>
    %cst_40 = arith.constant dense<0.000000e+00> : vector<16x128xf32>
    %54 = tpu.matmul %53, %51, %cst_40 {dimension_numbers = #tpu.dot_dimension_numbers<[1], [0], [0], [1], [0, 0, 1, 1], [], []>} : vector<16x32xf32>, vector<32x128xf32>, vector<16x128xf32> -> vector<16x128xf32>
    %c5_41 = arith.constant 5 : index
    %c0_42 = arith.constant 0 : index
    %c0_43 = arith.constant 0 : index
    %55 = vector.load %arg4[%c5_41, %c0_42, %c0_43] : memref<6x32x1xf32, #tpu.memory_space<vmem>>, vector<1x16x1xf32>
    %56 = vector.shape_cast %55 : vector<1x16x1xf32> to vector<16x1xf32>
    %57 = vector.broadcast %56 : vector<16x1xf32> to vector<16x128xf32>
    %58 = arith.addf %54, %57 : vector<16x128xf32>
    %cst_44 = arith.constant -1.200000e+01 : f32
    %59 = vector.broadcast %cst_44 : f32 to vector<16x128xf32>
    %60 = arith.maximumf %58, %59 : vector<16x128xf32>
    %c0_45 = arith.constant 0 : index
    %c0_46 = arith.constant 0 : index
    %61 = vector.load %arg5[%c0_45, %c0_46] : memref<16x128xf32, #tpu.memory_space<vmem>>, vector<16x128xf32>
    tpu.vector_store %arg5[%c0_45, %c0_46], %60 {strides = array<i32>} : memref<16x128xf32, #tpu.memory_space<vmem>>, vector<16x128xf32>,
    %c0_47 = arith.constant 0 : index
    %c0_48 = arith.constant 0 : index
    %62 = vector.load %arg6[%c0_47, %c0_48] : memref<8x128xf32, #tpu.memory_space<vmem>>, vector<8x128xf32>
    tpu.vector_store %arg6[%c0_47, %c0_48], %26 {strides = array<i32>} : memref<8x128xf32, #tpu.memory_space<vmem>>, vector<8x128xf32>,
    %c0_49 = arith.constant 0 : index
    %c0_50 = arith.constant 0 : index
    %63 = vector.load %arg7[%c0_49, %c0_50] : memref<8x128xf32, #tpu.memory_space<vmem>>, vector<8x128xf32>
    tpu.vector_store %arg7[%c0_49, %c0_50], %27 {strides = array<i32>} : memref<8x128xf32, #tpu.memory_space<vmem>>, vector<8x128xf32>,
    return
  }
  func.func @transform_0(%arg0: i32) -> (i32, i32) {
    %c0_i32 = arith.constant 0 : i32
    %c0_i32_0 = arith.constant 0 : i32
    return %c0_i32, %arg0 : i32, i32
  }
  func.func @transform_1(%arg0: i32) -> (i32, i32) {
    %c0_i32 = arith.constant 0 : i32
    %c0_i32_0 = arith.constant 0 : i32
    return %c0_i32, %arg0 : i32, i32
  }
  func.func @transform_2(%arg0: i32) -> (i32, i32, i32) {
    %c0_i32 = arith.constant 0 : i32
    %c0_i32_0 = arith.constant 0 : i32
    %c0_i32_1 = arith.constant 0 : i32
    %c0_i32_2 = arith.constant 0 : i32
    return %c0_i32, %c0_i32_0, %c0_i32_1 : i32, i32, i32
  }
  func.func @transform_3(%arg0: i32) -> (i32, i32, i32) {
    %c0_i32 = arith.constant 0 : i32
    %c0_i32_0 = arith.constant 0 : i32
    %c0_i32_1 = arith.constant 0 : i32
    %c0_i32_2 = arith.constant 0 : i32
    return %c0_i32, %c0_i32_0, %c0_i32_1 : i32, i32, i32
  }
  func.func @transform_4(%arg0: i32) -> (i32, i32) {
    %c0_i32 = arith.constant 0 : i32
    %c0_i32_0 = arith.constant 0 : i32
    return %c0_i32, %arg0 : i32, i32
  }
  func.func @transform_5(%arg0: i32) -> (i32, i32) {
    %c0_i32 = arith.constant 0 : i32
    %c0_i32_0 = arith.constant 0 : i32
    return %c0_i32, %arg0 : i32, i32
  }
  func.func @transform_6(%arg0: i32) -> (i32, i32) {
    %c0_i32 = arith.constant 0 : i32
    %c0_i32_0 = arith.constant 0 : i32
    return %c0_i32, %arg0 : i32, i32
  }
}

</mosaic_0001>

<bundles_post_ra>
// kernel: csvae_forward.1
= control target key start
LH: loop header
LB: loop body
LE: loop exit
PB: predicated region body
PF: predicated region fallthrough
CT: control target
= control target key end

     0   :  { %12 = vsyncpa [#allocation3], 0  ;;  %s2092_s0 = inlined_call_operand.hbm [shape: f32[16,256], index: 0, kind: input, shape index: {}]   ;;  %s2093_s1 = inlined_call_operand.vmem [shape: f32[8,256], index: 1, kind: input, shape index: {}]   ;;  %s2094_s2 = inlined_call_operand.vmem [shape: f32[6,32,32], index: 2, kind: input, shape index: {}]   ;;  %s2095_s3 = inlined_call_operand.vmem [shape: f32[6,32,1], index: 3, kind: input, shape index: {}]   ;;  %s2096_s4 = inlined_call_operand.hbm [shape: f32[16,256], index: 4, kind: output, shape index: {0}]   ;;  %s2097_s5 = inlined_call_operand.hbm [shape: f32[8,256], index: 5, kind: output, shape index: {1}]   ;;  %s2098_s6 = inlined_call_operand.hbm [shape: f32[8,256], index: 6, kind: output, shape index: {2}]  }
   0x1   :  { %14 = vsyncpa [#allocation3 + $0x1], 0 }
   0x2   :  { %15 = vsyncpa [#allocation4], 0 }
   0x3   :  { %17 = vsyncpa [#allocation4 + $0x1], 0 }
   0x4   :  { %18 = vsyncpa [#allocation7], 0 }
   0x5   :  { %20 = vsyncpa [#allocation7 + $0x1], 0  ;;  %s1717_s21 = smov 0   ;;  %s1719_s22 = smov 0  }
   0x6   :  { %s1721_s23 = smov 0   ;;  %s1723_s24 = smov 0  }
   0x7 LB: > { %s1738_s25 = sadd.s32 4294967295, %s1669_s24   ;;  %s2100_s26 = sadd.s32 4294967294, %s1669_s24   ;;  %s1669_s24 = sphi %s1723_s24, %s2114_s24   ;;  %s1665_s23 = sphi %s1721_s23, %s2113_s23   ;;  %s1661_s22 = sphi %s1719_s22, %s2112_s22   ;;  %s1657_s21 = sphi %s1717_s21, %s2111_s21  }
   0x8   : > { %s1742_s27 = sadd.s32 1, %s1669_s24   ;;  %s33_s28 = sadd.s32 1, %s1665_s23 }
   0x9   : > { %s30_s29 = ssub.s32 %s1669_s24, %s1742_s27  ;;  %p40_p0 = scmp.ne.s32.totalorder %s1665_s23, %s1661_s22 }
   0xa   : > { %p31_p1 = scmp.eq.s32.totalorder %s30_s29, 0  ;;  %p41_p2 = scmp.eq.s32.totalorder %s1669_s24, 0 }
   0xb   : > { %p46_p3 = scmp.ne.s32.totalorder %s1661_s22, %s1657_s21  ;;  %p47_p4 = scmp.eq.s32.totalorder %s1738_s25, 0 }
   0xc   : > { %s1754_s30 = scalar_select %p31_p1, %s1665_s23, %s33_s28  }
   0xd   : > { %p1756_p5 = por %p41_p2, %p40_p0  ;;  %p1760_p6 = por %p47_p4, %p46_p3 }
   0xe   : > { %p138_p7 = scmp.eq.s32.totalorder %s1738_s25, 1  ;;  %p144_p8 = scmp.eq.s32.totalorder %s2100_s26, 1 }
   0xf   : > { %p1468_p10 = scmp.lt.s32.totalorder %s1669_s24, 2  ;;  %s222_s11 = sand.u32 1, %s1665_s23  }
  0x10   : > { %p1769_p11 = por %p138_p7, %p40_p0  ;;  %p1773_p12 = por %p144_p8, %p46_p3 }
  0x11   : > { %s1236_s12 = sshll.u32 %s1669_s24, 7  ;;  %s1235_s13 = sshll.u32 %s222_s11, 4 }
  0x12   : > { %s2103_s9 = scalar_select %p1769_p11, 1, 0 }
  0x13   : > { %s2104_s10 = scalar_select %p1773_p12, 1, 0 }
  0x14   : > { %s1782_s16 = scalar_lea.hbm %s2092_s0, %s1236_s12  ;;  %s226_s17 = scalar_lea.vmem [#allocation2], %s1235_s13 }
  0x15   : > { %s232_s18 = sshll.u32 %s226_s17, 4  ;;  %p1786_p13 = pnand %p1468_p10, %p1756_p5  ;;  %s1790_s18 = int_to_ptr.vmem [resolvable:$true] %s232_s18 }
  0x16   : > { %s1793_s20 = scalar_lea.sflag [#allocation3], %s222_s11  ;;  %s1513_s28 = scalar_lea.hbm %s1782_s16, 256 }
  0x17   : > { %p1514_p1 = scmp.ne.s32.totalorder %s1782_s16, %s1513_s28  ;;  %p1515_p2 = pneg %p1786_p13 }
  0x18   : > { %s1518_s12 = scalar_lea.hbm %s2092_s0, 512  ;;  %p1519_p5 = scmp.lt.u32.totalorder %s1782_s16, %s2092_s0 }
  0x19   : > { %p1516_p3 = pnand %p1515_p2, %p1514_p1  ;;  %p1520_p7 = scmp.lt.u32.totalorder %s1518_s12, %s1513_s28 }
  0x1a   : > { %p1522_p10 = scmp.lt.u32.totalorder %s1513_s28, %s1782_s16 }
  0x1b   : > { %p1517_p4 = pneg %p1516_p3  ;;  %p1521_p8 = por %p1520_p7, %p1519_p5 }
  0x1d   : > { %p1523_p9 = por %p1522_p10, %p1521_p8 }
  0x1f   : > { %p1524_p0 = pnand %p1523_p9, %p1517_p4 }
  0x21   : > { %1527 = shalt.err (!%p1524_p0)
}
  0x22   : > { %s1528_s11 = scalar_lea.vmem %s1790_s18, 256  ;;  %s1671_s15 = smov [#allocation2]  }
  0x23   : > { %p1529_p1 = scmp.ne.s32.totalorder %s1790_s18, %s1528_s11  ;;  %s1533_s17 = sshll.u32 %s1671_s15, 4  ;;  %s1534_s17 = int_to_ptr.vmem [resolvable:$false] %s1533_s17 }
  0x24   : > { %s1535_s29 = scalar_lea.vmem %s1534_s17, 512  ;;  %p1536_p11 = scmp.lt.s32.totalorder %s1790_s18, %s1534_s17 }
  0x25   : > { %p1531_p3 = pnand %p1529_p1, %p1515_p2  ;;  %p1537_p5 = scmp.lt.s32.totalorder %s1535_s29, %s1528_s11 }
  0x27   : > { %p1532_p12 = pneg %p1531_p3  ;;  %p1538_p7 = por %p1537_p5, %p1536_p11 }
  0x29   : > { %p1539_p8 = pnand %p1538_p7, %p1532_p12 }
  0x2b   : > { %1542 = shalt.err (!%p1539_p8)
}
  0x2c   : > { %s1672_s28 = smov 256   ;;  %s1673_s7 = smov 128  }
  0x2d   : > { %s1674_s12 = smov 8   ;;  %p247_p9 = scmp.lt.s32.totalorder %s1669_s24, 3 }
  0x2e   : > { %1457 = dma.hbm_to_vmem [thread:$0]  (!%p1786_p13), %s1782_s16, 256, %s1790_s18, %s1793_s20, %s1672_s28, %s1673_s7, %s1674_s12  }
  0x2f   : > { %p2106_p0 = scmp.ge.s32.totalorder %s1669_s24, 1 }
  0x31   : > { %p248_p2 = pnand %p2106_p0, %p247_p9 }
  0x32   : > { %s1825_s13 = sand.u32 (!%p248_p2), 1, %s1661_s22  }
  0x33   : > { %251 = sbr.rel (%p248_p2) target bundleno = 1442 (0x5a2), region = 36  ;;  %s1238_s14 = sshll.u32 (!%p248_p2), %s1825_s13, 4 }
  0x34   : > { %s254_s11 = scalar_lea.sflag (!%p248_p2), [#allocation3], %s1825_s13  ;;  %s257_s15 = scalar_lea.vmem (!%p248_p2), [#allocation2], %s1238_s14 }
  0x3a   : > { %1644 = dma.done.wait (%p1760_p6), %s254_s11, 256  }
  0x3b   : > { %1646 = vsyncadd (%p1760_p6), %s254_s11, 4294967040  ;;  %v1675_v0 = vmov 0   ;;  %vm334_vm0 = vcmask 130048   ;;  %v304_v1 = vld [vmem:[%s257_s15] sm:$0xff]  ;;  %v305_v2 = vld [vmem:[%s257_s15 + $0x8] sm:$0xff]  ;;  %vm466_vm1 = vcmask 261120  }
  0x3c   : > { %1509 = vset.pattern.permute.xlu0 %v1675_v0  ;;  %1510 = vset.pattern.permute.xlu1 %v1675_v0  ;;  %v306_v3 = vld [vmem:[%s2094_s2] sm:$0xff]  ;;  %v1410_v4 = vpack.c.bf16 %v305_v2, %v304_v1  ;;  %v312_v6 = vld [vmem:[%s2095_s3 + $0x10] sm:$0xff]  ;;  %v307_v7 = vld [vmem:[%s2094_s2 + $0x8] sm:$0xff]  ;;  %vm701_vm2 = vcmask 64512   ;;  %s1240_s19 = sshll.u32 %s1825_s13, 3  ;;  %p300_p6 = scmp.lt.s32.totalorder %s1738_s25, 1 }
  0x3d   : > { %1346 = vmatprep.mubr.msk.f32.mxu0 %vm334_vm0, %v306_v3  ;;  %v310_v5 = vld [vmem:[%s2095_s3] sm:$0xff]  ;;  %326 = vperm.xlu1 %1510, %v312_v6   ;;  %v311_v8 = vld [vmem:[%s2095_s3 + $0x8] sm:$0xff]  ;;  %v308_v9 = vld [vmem:[%s2094_s2 + $0x10] sm:$0xff]  ;;  %s1941_s20 = scalar_lea.vmem [#allocation8], %s1240_s19  ;;  %s1944_s17 = scalar_lea.vmem [#allocation6], %s1240_s19 }
  0x3e   : > { %1411 = vmatprep.subr.bf16.mxu0 %v1410_v4  ;;  %316 = vperm.xlu0 %1509, %v310_v5   ;;  %v313_v10 = vld [vmem:[%s2095_s3 + $0x18] sm:$0xff]  ;;  %v1251_v12 = vld [vmem:[%s2095_s3 + $0x20] sm:$0xff]  ;;  %v1252_v13 = vld [vmem:[%s2095_s3 + $0x28] sm:$0xff]  ;;  %s301_s8 = scalar_select %p300_p6, %s1738_s25, 1 }
  0x3f   : > { %1413 = vmatpush3.bf16.msra.mxu0 %v1410_v4  ;;  %v309_v11 = vld [vmem:[%s2094_s2 + $0x18] sm:$0xff]  ;;  %v1253_v14 = vld [vmem:[%s2095_s3 + $0x30] sm:$0xff]  ;;  %v1262_v16 = vld [vmem:[%s2095_s3 + $0x48] sm:$0xff]  ;;  %s1042_s7 = sand.u32 1, %s1738_s25   ;;  %s1076_s18 = sshll.u32 %s1944_s17, 4  ;;  %s1077_s18 = int_to_ptr.vmem [resolvable:$true] %s1076_s18 }
  0x40   : > { %v1254_v15 = vld [vmem:[%s2095_s3 + $0x38] sm:$0xff]  ;;  %v1261_v17 = vld [vmem:[%s2095_s3 + $0x40] sm:$0xff]  ;;  %v1270_v19 = vld [vmem:[%s2095_s3 + $0x68] sm:$0xff]  ;;  %s1242_s29 = sshll.u32 %s301_s8, 3  ;;  %s1089_s19 = sshll.u32 %s1941_s20, 4  ;;  %s1090_s19 = int_to_ptr.vmem [resolvable:$true] %s1089_s19 }
  0x41   : > { %331 = vperm.xlu1 %1510, %v313_v10   ;;  %v1269_v18 = vld [vmem:[%s2095_s3 + $0x60] sm:$0xff]  ;;  %v1271_v20 = vld [vmem:[%s2095_s3 + $0x70] sm:$0xff]  ;;  %v1272_v21 = vld [vmem:[%s2095_s3 + $0x78] sm:$0xff]  ;;  %s303_s12 = scalar_lea.vmem %s2093_s1, %s1242_s29  ;;  %s1999_s8 = scalar_lea.sflag [#allocation7], %s1042_s7 }
  0x42   : > { %1347 = vmatmul.mubr.msk.f32.vlgmr.msra.gmra.mrb[0].mxu0 %vm334_vm0, %v307_v7  ;;  %321 = vperm.xlu0 %1509, %v311_v8   ;;  %v1281_v22 = vld [vmem:[%s2095_s3 + $0x80] sm:$0xff]  ;;  %v1282_v23 = vld [vmem:[%s2095_s3 + $0x88] sm:$0xff]  ;;  %v1283_v24 = vld [vmem:[%s2095_s3 + $0x90] sm:$0xff]  ;;  %s1543_s26 = scalar_lea.vmem %s1077_s18, 128  ;;  %p2107_p12 = scmp.ne.s32.totalorder %s2103_s9, 0 }
  0x43   : > { %1349 = vmatprep.mubr.msk.f32.mxu0 %vm334_vm0, %v308_v9  ;;  %v1284_v25 = vld [vmem:[%s2095_s3 + $0x98] sm:$0xff]  ;;  %v1291_v26 = vld [vmem:[%s2095_s3 + $0xa0] sm:$0xff]  ;;  %v1292_v27 = vld [vmem:[%s2095_s3 + $0xa8] sm:$0xff]  ;;  %p1544_p11 = scmp.ne.s32.totalorder %s1077_s18, %s1543_s26  ;;  %s1676_s29 = smov [#allocation6]  }
  0x44   : > { %v1247_v28 = vld [vmem:[%s2094_s2 + $0x20] sm:$0xff]  ;;  %v1248_v47 = vld [vmem:[%s2094_s2 + $0x28] sm:$0xff]  ;;  %v1249_v48 = vld [vmem:[%s2094_s2 + $0x30] sm:$0xff]  ;;  %s1547_s28 = sshll.u32 %s1676_s29, 4  ;;  %s1548_s28 = int_to_ptr.vmem [resolvable:$false] %s1547_s28 }
  0x45   : > { %453 = vperm.xlu1 %1510, %v1252_v13   ;;  %1360 = vmatprep.mubr.msk.f32.mxu1 %vm466_vm1, %v1247_v28  ;;  %v1250_v49 = vld [vmem:[%s2094_s2 + $0x38] sm:$0xff]  ;;  %v1259_v50 = vld [vmem:[%s2094_s2 + $0x40] sm:$0xff]  ;;  %v1260_v5 = vld [vmem:[%s2094_s2 + $0x48] sm:$0xff]  ;;  %p1545_p13 = pnand %p1544_p11, %p2107_p12  ;;  %p1550_p10 = scmp.lt.s32.totalorder %s1077_s18, %s1548_s28 }
  0x46   : > { %1350 = vmatmul.mubr.msk.f32.gmra.mrb[2].mxu0 %vm334_vm0, %v309_v11  ;;  %448 = vperm.xlu0 %1509, %v1251_v12   ;;  %v1265_v6 = vld [vmem:[%s2094_s2 + $0x60] sm:$0xff] }
  0x47   : > { %1374 = vmatprep.mubr.msk.f32.mxu0 %vm466_vm1, %v1259_v50  ;;  %p1546_p4 = pneg %p1545_p13 }
  0x49   : > { %463 = vperm.xlu1 %1510, %v1254_v15   ;;  %v665_v15 = vld [vmem:[%s303_s12] sm:$0xff]  ;;  %s1989_s12 = sshll.u32 %s1738_s25, 7  ;;  %s1549_s25 = scalar_lea.vmem %s1548_s28, 256 }
  0x4a   : > { %458 = vperm.xlu0 %1509, %v1253_v14   ;;  %s1995_s16 = scalar_lea.hbm %s2097_s5, %s1989_s12  ;;  %p1551_p1 = scmp.lt.s32.totalorder %s1549_s25, %s1543_s26 }
  0x4c   : > { %p1552_p3 = por %p1551_p1, %p1550_p10 }
  0x4d   : > { %576 = vperm.xlu1 %1510, %v1261_v17  }
  0x4e   : > { %581 = vperm.xlu0 %1509, %v1262_v16   ;;  %p1553_p5 = pnand %p1552_p3, %p1546_p4 }
  0x51   : > { %688 = vperm.xlu1 %1510, %v1270_v19   ;;  %v1266_v19 = vld [vmem:[%s2094_s2 + $0x68] sm:$0xff] }
  0x52   : > { %683 = vperm.xlu0 %1509, %v1269_v18  }
  0x55   : > { %698 = vperm.xlu1 %1510, %v1272_v21   ;;  %v1268_v21 = vld [vmem:[%s2094_s2 + $0x78] sm:$0xff] }
  0x56   : > { %693 = vperm.xlu0 %1509, %v1271_v20   ;;  %v1267_v20 = vld [vmem:[%s2094_s2 + $0x70] sm:$0xff] }
  0x59   : > { %820 = vperm.xlu1 %1510, %v1282_v23  }
  0x5a   : > { %815 = vperm.xlu0 %1509, %v1281_v22   ;;  %v1277_v22 = vld [vmem:[%s2094_s2 + $0x80] sm:$0xff] }
  0x5d   : > { %830 = vperm.xlu1 %1510, %v1284_v25  }
  0x5e   : > { %825 = vperm.xlu0 %1509, %v1283_v24  }
  0x61   : > { %947 = vperm.xlu1 %1510, %v1292_v27  }
  0x62   : > { %942 = vperm.xlu0 %1509, %v1291_v26  }
  0xbc   : > { %v327_v30 = vpop.permute.xlu1 %326 }
  0xbd   : > { %v317_v29 = vpop.permute.xlu0 %316 }
  0xc0   : > { %v332_v37 = vpop.permute.xlu1 %331 }
  0xc1   : > { %v322_v31 = vpop.permute.xlu0 %321 }
  0xc4   : > { %v454_v51 = vpop.permute.xlu1 %453 }
  0xc5   : > { %v449_v52 = vpop.permute.xlu0 %448 }
  0xc8   : > { %v464_v58 = vpop.permute.xlu1 %463 }
  0xc9   : > { %v459_v61 = vpop.permute.xlu0 %458 }
  0xcc   : > { %v577_v9 = vpop.permute.xlu1 %576 }
  0xcd   : > { %v582_v7 = vpop.permute.xlu0 %581 }
  0xd0   : > { %v689_v23 = vpop.permute.xlu1 %688 }
  0xd1   : > { %v684_v24 = vpop.permute.xlu0 %683 }
 0x115   : > { %v1348_v32 = vpop.f32.mrb[0].mxu0 }
 0x116   : > { %v419_v33 = vadd.f32 %v1348_v32, %v322_v31  ;;  %v413_v34 = vpop.f32.mrb[1].mxu0 }
 0x117   : > { %v414_v35 = vadd.f32 %v413_v34, %v317_v29 }
 0x118   : > { %v433_v36 = vmax.f32 %v419_v33, 0.0  ;;  %v694_v33 = vpop.permute.xlu0 %693 }
 0x119   : > { %v432_v38 = vmax.f32 %v414_v35, 0.0  ;;  %v1351_v39 = vpop.f32.mrb[2].mxu0 }
 0x11a   : > { %v429_v40 = vadd.f32 %v1351_v39, %v332_v37  ;;  %v423_v41 = vpop.f32.mrb[3].mxu0 }
 0x11b   : > { %v424_v42 = vadd.f32 %v423_v41, %v327_v30  ;;  %v1414_v43 = vpack.c.bf16 %v433_v36, %v432_v38  ;;  %v699_v30 = vpop.permute.xlu1 %698  ;;  %v1278_v41 = vld [vmem:[%s2094_s2 + $0x88] sm:$0xff] }
 0x11c   : > { %v435_v44 = vmax.f32 %v429_v40, 0.0 }
 0x11d   : > { %v434_v45 = vmax.f32 %v424_v42, 0.0  ;;  %1415 = vmatprep.subr.bf16.mxu1 %v1414_v43  ;;  %v1279_v42 = vld [vmem:[%s2094_s2 + $0x90] sm:$0xff] }
 0x11e   : > { %1417 = vmatpush3.bf16.msra.mxu1 %v1414_v43  ;;  %v1280_v43 = vld [vmem:[%s2094_s2 + $0x98] sm:$0xff] }
 0x11f   : > { %v1418_v46 = vpack.c.bf16 %v435_v44, %v434_v45  ;;  %v1289_v44 = vld [vmem:[%s2094_s2 + $0xa0] sm:$0xff]  ;;  %v821_v45 = vpop.permute.xlu1 %820 }
 0x121   : > { %1419 = vmatprep.subr.bf16.mxu1 %v1418_v46 }
 0x122   : > { %1421 = vmatpush3.bf16.msra.mxu1 %v1418_v46  ;;  %v816_v46 = vpop.permute.xlu0 %815 }
 0x125   : > { %1361 = vmatmul.mubr.msk.f32.vlgmr.msra.gmra.mrb[0].mxu1 %vm466_vm1, %v1248_v47 }
 0x126   : > { %1363 = vmatprep.mubr.msk.f32.mxu1 %vm466_vm1, %v1249_v48 }
 0x129   : > { %1364 = vmatmul.mubr.msk.f32.gmra.mrb[2].mxu1 %vm466_vm1, %v1250_v49 }
 0x12a   : > { %1393 = vmatprep.mubr.msk.f32.mxu1 %vm466_vm1, %v1277_v22 }
 0x1f8   : > { %v1362_v53 = vpop.f32.mrb[0].mxu1 }
 0x1f9   : > { %v551_v54 = vadd.f32 %v1362_v53, %v454_v51  ;;  %v545_v55 = vpop.f32.mrb[1].mxu1 }
 0x1fa   : > { %v546_v56 = vadd.f32 %v545_v55, %v449_v52  ;;  %v831_v52 = vpop.permute.xlu1 %830  ;;  %v826_v55 = vpop.permute.xlu0 %825 }
 0x1fb   : > { %v565_v57 = vmax.f32 %v551_v54, 0.0 }
 0x1fc   : > { %v564_v59 = vmax.f32 %v546_v56, 0.0  ;;  %v1365_v60 = vpop.f32.mrb[2].mxu1 }
 0x1fd   : > { %v561_v62 = vadd.f32 %v1365_v60, %v464_v58  ;;  %v555_v63 = vpop.f32.mrb[3].mxu1 }
 0x1fe   : > { %v1422_v0 = vpack.c.bf16 %v565_v57, %v564_v59  ;;  %v556_v1 = vadd.f32 %v555_v63, %v459_v61  ;;  %v1290_v63 = vld [vmem:[%s2094_s2 + $0xa8] sm:$0xff] }
 0x1ff   : > { %v567_v2 = vmax.f32 %v561_v62, 0.0 }
 0x200   : > { %v566_v3 = vmax.f32 %v556_v1, 0.0  ;;  %1423 = vmatprep.subr.bf16.mxu0 %v1422_v0 }
 0x201   : > { %1425 = vmatpush3.bf16.msra.mxu0 %v1422_v0 }
 0x202   : > { %v1426_v4 = vpack.c.bf16 %v567_v2, %v566_v3 }
 0x204   : > { %1427 = vmatprep.subr.bf16.mxu0 %v1426_v4 }
 0x205   : > { %1429 = vmatpush3.bf16.msra.mxu0 %v1426_v4 }
 0x208   : > { %1375 = vmatmul.mubr.msk.f32.vlgmr.msra.gmra.mrb[4].mxu0 %vm466_vm1, %v1260_v5 }
 0x209   : > { %1379 = vmatprep.mubr.msk.f32.mxu0 %vm701_vm2, %v1265_v6 }
 0x2db   : > { %v1376_v8 = vpop.f32.mrb[4].mxu0 }
 0x2dc   : > { %v662_v10 = vadd.f32 %v1376_v8, %v582_v7  ;;  %v656_v11 = vpop.f32.mrb[5].mxu0 }
 0x2dd   : > { %v657_v12 = vadd.f32 %v656_v11, %v577_v9 }
 0x2de   : > { %v666_v13 = vmul.f32 0.5, %v662_v10  ;;  %1036 = vst [vmem:[%s1941_s20] sm:$0xff] %v662_v10 }
 0x2df   : > { %1035 = vst [vmem:[%s1944_s17] sm:$0xff] %v657_v12 }
 0x2e0   : > { %v667_v14 = vmul.f32 1.442695, %v666_v13 }
 0x2e2   : > { %1511 = vpow2.f32 %v667_v14 }
 0x2ec   : > { %v1512_v16 = vpop.eup %1511 }
 0x2ed   : > { %v669_v17 = vmul.f32 %v1512_v16, %v665_v15 }
 0x2ef   : > { %v670_v18 = vadd.f32 %v669_v17, %v657_v12 }
 0x2f1   : > { %1377 = vmatprep.subr.mxu0 %v670_v18 }
 0x2f2   : > { %1378 = vmatpush3.msra.mxu0 %v670_v18 }
 0x2f3   : > { %1380 = vmatmul.mubr.msk.f32.vlgmr.msra.gmra.mrb[6].mxu0 %vm701_vm2, %v1266_v19 }
 0x2f4   : > { %1382 = vmatprep.mubr.msk.f32.mxu0 %vm701_vm2, %v1267_v20 }
 0x2f7   : > { %1383 = vmatmul.mubr.msk.f32.gmra.mrb[8].mxu0 %vm701_vm2, %v1268_v21 }
 0x2f8   : > { %1407 = vmatprep.mubr.msk.f32.mxu0 %vm466_vm1, %v1289_v44 }
 0x3c6   : > { %v1381_v25 = vpop.f32.mrb[6].mxu0 }
 0x3c7   : > { %v786_v26 = vadd.f32 %v1381_v25, %v689_v23  ;;  %v780_v27 = vpop.f32.mrb[7].mxu0 }
 0x3c8   : > { %v781_v28 = vadd.f32 %v780_v27, %v684_v24 }
 0x3c9   : > { %v800_v29 = vmax.f32 %v786_v26, 0.0 }
 0x3ca   : > { %v799_v31 = vmax.f32 %v781_v28, 0.0  ;;  %v1384_v32 = vpop.f32.mrb[8].mxu0 }
 0x3cb   : > { %v796_v34 = vadd.f32 %v1384_v32, %v699_v30  ;;  %v790_v35 = vpop.f32.mrb[9].mxu0 }
 0x3cc   : > { %v1430_v36 = vpack.c.bf16 %v800_v29, %v799_v31  ;;  %v791_v37 = vadd.f32 %v790_v35, %v694_v33 }
 0x3cd   : > { %v802_v38 = vmax.f32 %v796_v34, 0.0 }
 0x3ce   : > { %v801_v39 = vmax.f32 %v791_v37, 0.0  ;;  %1431 = vmatprep.subr.bf16.mxu1 %v1430_v36 }
 0x3cf   : > { %1433 = vmatpush3.bf16.msra.mxu1 %v1430_v36 }
 0x3d0   : > { %v1434_v40 = vpack.c.bf16 %v802_v38, %v801_v39 }
 0x3d2   : > { %1435 = vmatprep.subr.bf16.mxu1 %v1434_v40 }
 0x3d3   : > { %1437 = vmatpush3.bf16.msra.mxu1 %v1434_v40 }
 0x3d6   : > { %1394 = vmatmul.mubr.msk.f32.vlgmr.msra.gmra.mrb[4].mxu1 %vm466_vm1, %v1278_v41 }
 0x3d7   : > { %1396 = vmatprep.mubr.msk.f32.mxu1 %vm466_vm1, %v1279_v42 }
 0x3da   : > { %1397 = vmatmul.mubr.msk.f32.gmra.mrb[6].mxu1 %vm466_vm1, %v1280_v43 }
 0x4a9   : > { %v1395_v47 = vpop.f32.mrb[4].mxu1 }
 0x4aa   : > { %v917_v48 = vadd.f32 %v1395_v47, %v821_v45  ;;  %v911_v49 = vpop.f32.mrb[5].mxu1 }
 0x4ab   : > { %v912_v50 = vadd.f32 %v911_v49, %v816_v46 }
 0x4ac   : > { %v931_v51 = vmax.f32 %v917_v48, 0.0 }
 0x4ad   : > { %v930_v53 = vmax.f32 %v912_v50, 0.0  ;;  %v1398_v54 = vpop.f32.mrb[6].mxu1 }
 0x4ae   : > { %v927_v56 = vadd.f32 %v1398_v54, %v831_v52  ;;  %v921_v57 = vpop.f32.mrb[7].mxu1 }
 0x4af   : > { %v1438_v58 = vpack.c.bf16 %v931_v51, %v930_v53  ;;  %v922_v59 = vadd.f32 %v921_v57, %v826_v55 }
 0x4b0   : > { %v933_v60 = vmax.f32 %v927_v56, 0.0 }
 0x4b1   : > { %v932_v61 = vmax.f32 %v922_v59, 0.0  ;;  %1439 = vmatprep.subr.bf16.mxu0 %v1438_v58 }
 0x4b2   : > { %1441 = vmatpush3.bf16.msra.mxu0 %v1438_v58 }
 0x4b3   : > { %v1442_v62 = vpack.c.bf16 %v933_v60, %v932_v61 }
 0x4b5   : > { %1443 = vmatprep.subr.bf16.mxu0 %v1442_v62 }
 0x4b6   : > { %1445 = vmatpush3.bf16.msra.mxu0 %v1442_v62 }
 0x4b9   : > { %1408 = vmatmul.mubr.msk.f32.vlgmr.msra.gmra.mrb[10].mxu0 %vm466_vm1, %v1290_v63 }
 0x4ba   : > { %1556 = shalt.err (!%p1553_p5)
}
 0x4bb   : > { %s1557_s17 = scalar_lea.hbm %s1995_s16, 128  ;;  %s1561_s15 = scalar_lea.hbm %s2097_s5, 256 }
 0x4bc   : > { %p1558_p7 = scmp.ne.s32.totalorder %s1995_s16, %s1557_s17  ;;  %p1562_p0 = scmp.lt.u32.totalorder %s1995_s16, %s2097_s5 }
 0x4bd   : > { %p1563_p2 = scmp.lt.u32.totalorder %s1561_s15, %s1557_s17  ;;  %p1565_p11 = scmp.lt.u32.totalorder %s1557_s17, %s1995_s16 }
 0x4be   : > { %p1559_p8 = pnand %p1558_p7, %p2107_p12 }
 0x4bf   : > { %p1564_p6 = por %p1563_p2, %p1562_p0 }
 0x4c0   : > { %p1560_p9 = pneg %p1559_p8 }
 0x4c1   : > { %p1566_p13 = por %p1565_p11, %p1564_p6 }
 0x4c3   : > { %p1567_p4 = pnand %p1566_p13, %p1560_p9 }
 0x4c5   : > { %1570 = shalt.err (!%p1567_p4)
}
 0x4c6   : > { %1449 = dma.vmem_to_hbm [thread:$0]  (%p2107_p12), %s1077_s18, 128, %s1995_s16, %s1999_s8  }
 0x4c7   : > { %s1087_s7 = scalar_lea.hbm %s2098_s6, %s1989_s12  ;;  %s1571_s11 = scalar_lea.vmem %s1090_s19, 128 }
 0x4c8   : > { %p1572_p10 = scmp.ne.s32.totalorder %s1090_s19, %s1571_s11  ;;  %s1677_s17 = smov [#allocation8]  }
 0x4c9   : > { %s1575_s15 = sshll.u32 %s1677_s17, 4  ;;  %s1576_s15 = int_to_ptr.vmem [resolvable:$false] %s1575_s15 }
 0x4ca   : > { %p1573_p1 = pnand %p1572_p10, %p2107_p12  ;;  %s1577_s29 = scalar_lea.vmem %s1576_s15, 256 }
 0x4cb   : > { %p1578_p5 = scmp.lt.s32.totalorder %s1090_s19, %s1576_s15  ;;  %p1579_p7 = scmp.lt.s32.totalorder %s1577_s29, %s1571_s11 }
 0x4cc   : > { %p1574_p3 = pneg %p1573_p1 }
 0x4cd   : > { %p1580_p8 = por %p1579_p7, %p1578_p5 }
 0x4cf   : > { %p1581_p9 = pnand %p1580_p8, %p1574_p3 }
 0x4d1   : > { %1584 = shalt.err (!%p1581_p9)
}
 0x4d2   : > { %s1585_s16 = scalar_lea.hbm %s1087_s7, 128  ;;  %s1589_s28 = scalar_lea.hbm %s2098_s6, 256 }
 0x4d3   : > { %p1586_p0 = scmp.ne.s32.totalorder %s1087_s7, %s1585_s16  ;;  %p1590_p11 = scmp.lt.u32.totalorder %s1087_s7, %s2098_s6 }
 0x4d4   : > { %p1591_p13 = scmp.lt.u32.totalorder %s1589_s28, %s1585_s16  ;;  %p1593_p10 = scmp.lt.u32.totalorder %s1585_s16, %s1087_s7 }
 0x4d5   : > { %p1587_p2 = pnand %p1586_p0, %p2107_p12 }
 0x4d6   : > { %p1592_p4 = por %p1591_p13, %p1590_p11 }
 0x4d7   : > { %p1588_p6 = pneg %p1587_p2 }
 0x4d8   : > { %p1594_p1 = por %p1593_p10, %p1592_p4 }
 0x4da   : > { %p1595_p3 = pnand %p1594_p1, %p1588_p6 }
 0x4dc   : > { %1598 = shalt.err (!%p1595_p3)
}
 0x4dd   : > { %1450 = dma.vmem_to_hbm [thread:$0]  (%p2107_p12), %s1090_s19, 128, %s1087_s7, %s1999_s8   ;;  %v948_v0 = vpop.permute.xlu1 %947  ;;  %v943_v2 = vpop.permute.xlu0 %942 }
 0x4de   : > { %s285_s11 = scalar_lea.vmem [#allocation5], %s1238_s14  ;;  %s2046_s16 = scalar_lea.hbm %s2096_s4, %s1989_s12 }
 0x4df   : > { %s1060_s17 = sshll.u32 %s285_s11, 4  ;;  %s1038_s14 = scalar_lea.sflag [#allocation4], %s1825_s13  ;;  %s2040_s17 = int_to_ptr.vmem [resolvable:$true] %s1060_s17 }
 0x4e0   : > { %s1599_s19 = scalar_lea.vmem %s2040_s17, 256  ;;  %s1678_s8 = smov [#allocation5]  }
 0x4e1   : > { %p1600_p5 = scmp.ne.s32.totalorder %s2040_s17, %s1599_s19  ;;  %s1603_s7 = sshll.u32 %s1678_s8, 4  ;;  %s1604_s7 = int_to_ptr.vmem [resolvable:$false] %s1603_s7 }
 0x4e2   : > { %s1605_s20 = scalar_lea.vmem %s1604_s7, 512  ;;  %p1606_p9 = scmp.lt.s32.totalorder %s2040_s17, %s1604_s7 }
 0x4e3   : > { %p1601_p7 = pnand %p1600_p5, %p2107_p12  ;;  %p1607_p0 = scmp.lt.s32.totalorder %s1605_s20, %s1599_s19 }
 0x4e5   : > { %p1602_p8 = pneg %p1601_p7  ;;  %p1608_p2 = por %p1607_p0, %p1606_p9 }
 0x4e7   : > { %p1609_p6 = pnand %p1608_p2, %p1602_p8 }
 0x58c   : > { %v1409_v1 = vpop.f32.mrb[10].mxu0 }
 0x58d   : > { %v1028_v3 = vadd.f32 %v1409_v1, %v948_v0  ;;  %v1022_v4 = vpop.f32.mrb[11].mxu0 }
 0x58e   : > { %v1023_v5 = vadd.f32 %v1022_v4, %v943_v2 }
 0x58f   : > { %v1032_v6 = vmax.f32 %v1028_v3, -12.0 }
 0x590   : > { %v1031_v7 = vmax.f32 %v1023_v5, -12.0 }
 0x591   : > { %1034 = vst [vmem:[%s285_s11 + $0x8] sm:$0xff] %v1032_v6 }
 0x592   : > { %1033 = vst [vmem:[%s285_s11] sm:$0xff] %v1031_v7 }
 0x593   : > { %1612 = shalt.err (!%p1609_p6)
}
 0x594   : > { %s1613_s12 = scalar_lea.hbm %s2046_s16, 256  ;;  %s1617_s26 = scalar_lea.hbm %s2096_s4, 512 }
 0x595   : > { %p1614_p11 = scmp.ne.s32.totalorder %s2046_s16, %s1613_s12  ;;  %p1618_p10 = scmp.lt.u32.totalorder %s2046_s16, %s2096_s4 }
 0x596   : > { %p1619_p1 = scmp.lt.u32.totalorder %s1617_s26, %s1613_s12  ;;  %p1621_p5 = scmp.lt.u32.totalorder %s1613_s12, %s2046_s16 }
 0x597   : > { %p1615_p13 = pnand %p1614_p11, %p2107_p12 }
 0x598   : > { %p1620_p3 = por %p1619_p1, %p1618_p10 }
 0x599   : > { %p1616_p4 = pneg %p1615_p13 }
 0x59a   : > { %p1622_p7 = por %p1621_p5, %p1620_p3 }
 0x59c   : > { %p1623_p8 = pnand %p1622_p7, %p1616_p4 }
 0x59e   : > { %1626 = shalt.err (!%p1623_p8)
}
 0x59f   : > { %s1679_s15 = smov 128   ;;  %s1680_s29 = smov 256  }
 0x5a0   : > { %s1681_s19 = smov 8  }
 0x5a1   : > { %1448 = dma.vmem_to_hbm [thread:$0]  (%p2107_p12), %s2040_s17, 256, %s2046_s16, %s1038_s14, %s1679_s15, %s1680_s29, %s1681_s19  }
 0x5a2 PF: > { %s1101_s8 = sand.u32 1, %s1657_s21   ;;  %p2108_p9 = scmp.ne.s32.totalorder %s2104_s10, 0 }
 0x5a3   : > { %p2109_p0 = scmp.ge.s32.totalorder %s1669_s24, 2  ;;  %s1102_s7 = scalar_lea.sflag [#allocation4], %s1101_s8 }
 0x5a5   : > { %p1459_p2 = pnand %p2109_p0, %p2108_p9 }
 0x5a7   : > { %1648 = dma.done.wait (!%p1459_p2), %s1102_s7, 256  }
 0x5a8   : > { %1650 = vsyncadd (!%p1459_p2), %s1102_s7, 4294967040  ;;  %s2110_s20 = sadd.s32 4294967294, %s1669_s24  }
 0x5a9   : > { %s1110_s12 = sand.u32 1, %s2110_s20  }
 0x5aa   : > { %s1111_s18 = scalar_lea.sflag [#allocation7], %s1110_s12 }
 0x5ab   : > { %1652 = dma.done.wait (!%p1459_p2), %s1111_s18, 256  }
 0x5ac   : > { %1654 = vsyncadd (!%p1459_p2), %s1111_s18, 4294967040  ;;  %p23_p12 = scmp.ge.s32.totalorder %s1742_s27, 4   ;;  %s2111_s21 = smov %s1661_s22 }
 0x5ad   : > { %s2112_s22 = smov %s1665_s23  ;;  %s2113_s23 = smov %s1754_s30 }
 0x5ae   : > { %s2114_s24 = smov %s1742_s27  ;;  %25 = sbr.rel (!%p23_p12) target bundleno = 7 (0x7), region = 126 }
 0x5b5   :  { %1125 = vsyncpa [#allocation3], 1 }
 0x5b6   :  { %1127 = vsyncpa [#allocation3 + $0x1], 1 }
 0x5b7   :  { %1128 = vsyncpa [#allocation4], 1 }
 0x5b8   :  { %1130 = vsyncpa [#allocation4 + $0x1], 1 }
 0x5b9   :  { %1131 = vsyncpa [#allocation7], 1 }
 0x5ba   :  { %1133 = vsyncpa [#allocation7 + $0x1], 1 }

</bundles_post_ra>
